<compile_context>
chip_gen: v7x
topology: tpu7x:2x2x1
jax: 0.10.0
libtpu: 0.0.40
codegen_flags: <defaults>
</compile_context>

<pallas_src>
import functools

import jax
import jax.numpy as jnp
from jax.experimental import pallas as pl
from jax.experimental.pallas import tpu as pltpu

_LANE = 128


def _round_up(x, m):
    return ((x + m - 1) // m) * m


def _cdiv(a, b):
    return -(-a // b)


def _num_tensorcores():
    """Best-effort count of TensorCores one kernel launch can shard over."""
    try:
        kind = jax.devices()[0].device_kind.lower()
    except Exception:
        return 1
    # Dual-TC (megacore-style) chips: v4, v5p, v7x.  Single-TC: v5e / v6e.
    if any(tag in kind for tag in ("v7", "v4", "v5p")):
        return 2
    return 1


def _vmem_budget():
    """(double-buffer budget bytes, scoped vmem_limit_bytes) per TensorCore."""
    cap = 128 << 20
    try:
        cap = int(getattr(pltpu.get_tpu_info(), "vmem_capacity_bytes", cap))
    except Exception:
        pass
    budget = min(24 << 20, cap // 3)            # v5e/v6e: 24 MiB; v7x: ~21 MiB
    limit = min(cap // 2, budget + (16 << 20))  # raise the scoped window to match
    return budget, limit


def _choose_tile_rows(n_rows, row_bytes, *, budget_bytes, sublane=8):
    """Largest row tile (multiple of `sublane`) whose buffers fit the budget."""
    cap = budget_bytes // max(row_bytes, 1)
    t = min(cap, _round_up(max(n_rows, 1), sublane))
    t = (t // sublane) * sublane
    return max(sublane, t)


# --------------------------- cross-entropy kernel ---------------------------

def _ce_sum_kernel(logits_ref, labels_ref, out_ref, *,
                   n_valid, tile_n, blocks_per_core):
    p = pl.program_id(0)          # megacore (parallel) axis
    i = pl.program_id(1)          # reduction (arbitrary) axis

    @pl.when(i == 0)
    def _():
        out_ref[...] = jnp.zeros_like(out_ref)

    x = logits_ref[...].astype(jnp.float32)                 # (tile_n, C)
    labels = labels_ref[...]                                # (tile_n, 1) int32

    # numerically stable log-sum-exp; exp(x - m) computed exactly once
    m = jnp.max(x, axis=-1, keepdims=True)                  # (tile_n, 1)
    lse = m + jnp.log(jnp.sum(jnp.exp(x - m), axis=-1, keepdims=True))

    # logit at the label via masked select (no one-hot materialization)
    col = jax.lax.broadcasted_iota(jnp.int32, x.shape, 1)
    tgt = jnp.sum(jnp.where(col == labels, x, 0.0), axis=-1, keepdims=True)

    # ragged-tail mask: rows past n_valid (garbage from the overhanging block
    # or rows re-read because the block index was clamped) contribute 0.
    row0 = (p * blocks_per_core + i) * tile_n
    row_ids = row0 + jax.lax.broadcasted_iota(jnp.int32, (tile_n, 1), 0)
    contrib = jnp.where(row_ids < n_valid, lse - tgt, 0.0)

    out_ref[...] += jnp.sum(contrib)                        # (1, 128) accumulator block


def _cross_entropy_sum(logits, labels2d, *, ncores, budget_bytes, vmem_limit):
    """sum over rows of (logsumexp(logits_r) - logits_r[label_r]) via Pallas."""
    n, c = logits.shape
    # logits double buffer + lane-padded labels double buffer, per row
    row_bytes = 2 * c * logits.dtype.itemsize + 2 * _LANE * 4
    tile_n = _choose_tile_rows(n, row_bytes, budget_bytes=budget_bytes)

    blocks_total = _cdiv(n, tile_n)
    blocks_per_core = _cdiv(blocks_total, ncores)
    last_block = blocks_total - 1

    def block_idx(p, i):
        # clamp so a core with no work re-reads the last block (masked out)
        return jnp.minimum(p * blocks_per_core + i, last_block)

    kernel = functools.partial(_ce_sum_kernel, n_valid=n, tile_n=tile_n,
                               blocks_per_core=blocks_per_core)
    parts = pl.pallas_call(
        kernel,
        out_shape=jax.ShapeDtypeStruct((1, ncores * _LANE), jnp.float32),
        grid=(ncores, blocks_per_core),
        in_specs=[
            pl.BlockSpec((tile_n, c), lambda p, i: (block_idx(p, i), 0)),
            pl.BlockSpec((tile_n, 1), lambda p, i: (block_idx(p, i), 0)),
        ],
        out_specs=pl.BlockSpec((1, _LANE), lambda p, i: (0, p)),
        compiler_params=pltpu.CompilerParams(
            dimension_semantics=("parallel", "arbitrary"),
            vmem_limit_bytes=vmem_limit),
        cost_estimate=pl.CostEstimate(
            flops=5 * n * c,
            transcendentals=n * c,
            bytes_accessed=logits.size * logits.dtype.itemsize
            + labels2d.size * 4 + ncores * _LANE * 4),
    )(logits, labels2d)
    return parts.reshape(ncores, _LANE)[:, 0].sum()


# ------------------------------ L1 penalty kernel ----------------------------

def _abs_sum_kernel(p_ref, out_ref, *, n_valid_rows, tile_r, blocks_per_core):
    p = pl.program_id(0)
    i = pl.program_id(1)

    @pl.when(i == 0)
    def _():
        out_ref[...] = jnp.zeros_like(out_ref)

    x = jnp.abs(p_ref[...].astype(jnp.float32))             # upcast in-vreg only
    row0 = (p * blocks_per_core + i) * tile_r
    row_ids = row0 + jax.lax.broadcasted_iota(jnp.int32, (tile_r, 1), 0)
    out_ref[...] += jnp.sum(jnp.where(row_ids < n_valid_rows, x, 0.0))


def _l1_sum(params, *, ncores, budget_bytes, vmem_limit):
    """sum(|params|) via a tiled streaming reduction in the native dtype."""
    flat = params.reshape(-1)                 # free reshape; dtype untouched
    size = flat.shape[0]
    rows = size // _LANE
    rem = size - rows * _LANE
    if rem:
        # TODO(synk): this pad copies the slab for non-multiple-of-128 sizes;
        # a manual-DMA kernel over the raw 1-D HBM ref would avoid it.
        flat = jnp.pad(flat, (0, _LANE - rem))
        rows += 1
    mat = flat.reshape(rows, _LANE)

    itemsize = mat.dtype.itemsize
    sublane = max(8, (4 // max(itemsize, 1)) * 8)   # 8 f32 / 16 bf16 / 32 int8
    row_bytes = 2 * _LANE * itemsize                # double-buffered input rows
    tile_r = _choose_tile_rows(rows, row_bytes, budget_bytes=budget_bytes,
                               sublane=sublane)

    blocks_total = _cdiv(rows, tile_r)
    blocks_per_core = _cdiv(blocks_total, ncores)
    last_block = blocks_total - 1

    def block_idx(p, i):
        return jnp.minimum(p * blocks_per_core + i, last_block)

    kernel = functools.partial(_abs_sum_kernel, n_valid_rows=rows,
                               tile_r=tile_r, blocks_per_core=blocks_per_core)
    parts = pl.pallas_call(
        kernel,
        out_shape=jax.ShapeDtypeStruct((1, ncores * _LANE), jnp.float32),
        grid=(ncores, blocks_per_core),
        in_specs=[pl.BlockSpec((tile_r, _LANE),
                               lambda p, i: (block_idx(p, i), 0))],
        out_specs=pl.BlockSpec((1, _LANE), lambda p, i: (0, p)),
        compiler_params=pltpu.CompilerParams(
            dimension_semantics=("parallel", "arbitrary"),
            vmem_limit_bytes=vmem_limit),
        cost_estimate=pl.CostEstimate(
            flops=rows * _LANE,
            transcendentals=0,
            bytes_accessed=rows * _LANE * itemsize + ncores * _LANE * 4),
    )(mat)
    return parts.reshape(ncores, _LANE)[:, 0].sum()


# --------------------------------- wrapper -----------------------------------

def l1_loss(logits, labels, params, alpha):
    """Returns {'loss': nll + alpha/2*sum(|params|), 'nll': nll} as f32 scalars."""
    n = logits.shape[0]
    labels2d = labels.reshape(n, 1).astype(jnp.int32)
    ncores = _num_tensorcores()
    budget, vmem_limit = _vmem_budget()

    nll = _cross_entropy_sum(logits, labels2d, ncores=ncores,
                             budget_bytes=budget,
                             vmem_limit=vmem_limit) / jnp.float32(n)
    # alpha applied here (wrapper scalar math), so changing alpha never recompiles
    penalty = (alpha / 2.0) * _l1_sum(params, ncores=ncores,
                                      budget_bytes=budget,
                                      vmem_limit=vmem_limit)
    return {"loss": nll + penalty, "nll": nll}


if __name__ == "__main__":
    key = jax.random.PRNGKey(0)
    k_logits, k_labels, k_params = jax.random.split(key, 3)

    N, C = 8, 32           # batch, num classes
    P, D = 32, 128         # synthetic "model params" slab

    logits = jax.random.normal(k_logits, (N, C), dtype=jnp.float32)
    labels = jax.random.randint(k_labels, (N,), 0, C, dtype=jnp.int32)
    params = jax.random.normal(k_params, (P, D), dtype=jnp.float32)
    alpha = 0.01

    out = l1_loss(logits, labels, params, alpha)
    jax.block_until_ready(out)

    # reference check (plain JAX)
    logp = jax.nn.log_softmax(logits, axis=-1)
    nll_ref = -jnp.mean(logp[jnp.arange(N), labels])
    loss_ref = nll_ref + alpha / 2.0 * jnp.sum(jnp.abs(params))
    assert jnp.allclose(out["nll"], nll_ref, rtol=1e-5, atol=1e-5)
    assert jnp.allclose(out["loss"], loss_ref, rtol=1e-5, atol=1e-5)

    print("KERNEL_OK")
</pallas_src>

<mosaic_0001>
module attributes {stable_mosaic.version = 11 : i64} {
  func.func @_ce_sum_kernel(%arg0: i32, %arg1: i32, %arg2: memref<8x32xf32, #tpu.memory_space<vmem>>, %arg3: memref<8x1xi32, #tpu.memory_space<vmem>>, %arg4: memref<1x128xf32, #tpu.memory_space<vmem>>) attributes {dimension_semantics = [#tpu.dimension_semantics<parallel>, #tpu.dimension_semantics<arbitrary>], iteration_bounds = array<i64: 1, 1>, scalar_prefetch = 0 : i64, scratch_operands = 0 : i64, tpu.core_type = #tpu.core_type<tc>, window_params = [{transform_indices = @transform_0, window_bounds = array<i64: 8, 32>}, {transform_indices = @transform_1, window_bounds = array<i64: 8, 1>}, {transform_indices = @transform_2, window_bounds = array<i64: 1, 128>}]} {
    %c0_i32 = arith.constant 0 : i32
    %0 = arith.cmpi eq, %arg1, %c0_i32 : i32
    %1 = arith.extui %0 : i1 to i32
    %c0_i32_0 = arith.constant 0 : i32
    %2 = arith.cmpi ne, %1, %c0_i32_0 : i32
    scf.if %2 {
      %cst_14 = arith.constant 0.000000e+00 : f32
      %40 = vector.broadcast %cst_14 : f32 to vector<1x128xf32>
      %c0_15 = arith.constant 0 : index
      %c0_16 = arith.constant 0 : index
      %41 = vector.load %arg4[%c0_15, %c0_16] : memref<1x128xf32, #tpu.memory_space<vmem>>, vector<1x128xf32>
      tpu.vector_store %arg4[%c0_15, %c0_16], %40 {strides = array<i32>} : memref<1x128xf32, #tpu.memory_space<vmem>>, vector<1x128xf32>,
    } else {
    }
    %c0 = arith.constant 0 : index
    %c0_1 = arith.constant 0 : index
    %3 = vector.load %arg2[%c0, %c0_1] : memref<8x32xf32, #tpu.memory_space<vmem>>, vector<8x32xf32>
    %c0_2 = arith.constant 0 : index
    %c0_3 = arith.constant 0 : index
    %4 = vector.load %arg3[%c0_2, %c0_3] : memref<8x1xi32, #tpu.memory_space<vmem>>, vector<8x1xi32>
    %cst = arith.constant dense<0xFF800000> : vector<8xf32>
    %5 = vector.multi_reduction <maximumf>, %3, %cst [1] : vector<8x32xf32> to vector<8xf32>
    %6 = vector.shape_cast %5 : vector<8xf32> to vector<8x1xf32>
    %7 = vector.broadcast %6 : vector<8x1xf32> to vector<8x32xf32>
    %8 = arith.subf %3, %7 : vector<8x32xf32>
    %9 = math.exp %8 : vector<8x32xf32>
    %cst_4 = arith.constant dense<0.000000e+00> : vector<8xf32>
    %10 = vector.multi_reduction <add>, %9, %cst_4 [1] : vector<8x32xf32> to vector<8xf32>
    %11 = vector.shape_cast %10 : vector<8xf32> to vector<8x1xf32>
    %12 = math.log %11 : vector<8x1xf32>
    %13 = arith.addf %6, %12 : vector<8x1xf32>
    %14 = tpu.iota {dimensions = array<i32: 1>} : vector<8x32xi32>
    %15 = vector.broadcast %4 : vector<8x1xi32> to vector<8x32xi32>
    %16 = arith.cmpi eq, %14, %15 : vector<8x32xi32>
    %cst_5 = arith.constant 0.000000e+00 : f32
    %17 = vector.broadcast %cst_5 : f32 to vector<8x32xf32>
    %18 = arith.select %16, %3, %17 : vector<8x32xi1>, vector<8x32xf32>
    %cst_6 = arith.constant dense<0.000000e+00> : vector<8xf32>
    %19 = vector.multi_reduction <add>, %18, %cst_6 [1] : vector<8x32xf32> to vector<8xf32>
    %20 = vector.shape_cast %19 : vector<8xf32> to vector<8x1xf32>
    %c1_i32 = arith.constant 1 : i32
    %21 = arith.muli %arg0, %c1_i32 : i32
    %22 = arith.addi %21, %arg1 : i32
    %c8_i32 = arith.constant 8 : i32
    %23 = arith.muli %22, %c8_i32 : i32
    %24 = tpu.iota {dimensions = array<i32: 0>} : vector<8x1xi32>
    %25 = vector.broadcast %23 : i32 to vector<8x1xi32>
    %26 = arith.addi %25, %24 : vector<8x1xi32>
    %c8_i32_7 = arith.constant 8 : i32
    %27 = vector.broadcast %c8_i32_7 : i32 to vector<8x1xi32>
    %28 = arith.cmpi slt, %26, %27 : vector<8x1xi32>
    %29 = arith.subf %13, %20 : vector<8x1xf32>
    %cst_8 = arith.constant 0.000000e+00 : f32
    %30 = vector.broadcast %cst_8 : f32 to vector<8x1xf32>
    %31 = arith.select %28, %29, %30 : vector<8x1xi1>, vector<8x1xf32>
    %c0_9 = arith.constant 0 : index
    %c0_10 = arith.constant 0 : index
    %32 = vector.load %arg4[%c0_9, %c0_10] : memref<1x128xf32, #tpu.memory_space<vmem>>, vector<1x128xf32>
    %33 = vector.shape_cast %31 : vector<8x1xf32> to vector<1x8x1xf32>
    %cst_11 = arith.constant dense<0.000000e+00> : vector<1xf32>
    %34 = vector.multi_reduction <add>, %33, %cst_11 [1, 2] : vector<1x8x1xf32> to vector<1xf32>
    %35 = vector.shape_cast %34 : vector<1xf32> to vector<1x1x1xf32>
    %36 = vector.extract %35[0, 0, 0] : f32 from vector<1x1x1xf32>
    %37 = vector.broadcast %36 : f32 to vector<1x128xf32>
    %38 = arith.addf %32, %37 : vector<1x128xf32>
    %c0_12 = arith.constant 0 : index
    %c0_13 = arith.constant 0 : index
    %39 = vector.load %arg4[%c0_12, %c0_13] : memref<1x128xf32, #tpu.memory_space<vmem>>, vector<1x128xf32>
    tpu.vector_store %arg4[%c0_12, %c0_13], %38 {strides = array<i32>} : memref<1x128xf32, #tpu.memory_space<vmem>>, vector<1x128xf32>,
    return
  }
  func.func @transform_0(%arg0: i32, %arg1: i32) -> (i32, i32) {
    %c1_i32 = arith.constant 1 : i32
    %0 = arith.muli %arg0, %c1_i32 : i32
    %1 = arith.addi %0, %arg1 : i32
    %c0_i32 = arith.constant 0 : i32
    %2 = arith.minsi %1, %c0_i32 : i32
    %c0_i32_0 = arith.constant 0 : i32
    %c0_i32_1 = arith.constant 0 : i32
    return %2, %c0_i32_0 : i32, i32
  }
  func.func @transform_1(%arg0: i32, %arg1: i32) -> (i32, i32) {
    %c1_i32 = arith.constant 1 : i32
    %0 = arith.muli %arg0, %c1_i32 : i32
    %1 = arith.addi %0, %arg1 : i32
    %c0_i32 = arith.constant 0 : i32
    %2 = arith.minsi %1, %c0_i32 : i32
    %c0_i32_0 = arith.constant 0 : i32
    %c0_i32_1 = arith.constant 0 : i32
    return %2, %c0_i32_0 : i32, i32
  }
  func.func @transform_2(%arg0: i32, %arg1: i32) -> (i32, i32) {
    %c0_i32 = arith.constant 0 : i32
    %c0_i32_0 = arith.constant 0 : i32
    return %c0_i32, %arg0 : i32, i32
  }
}

</mosaic_0001>

<bundles_post_ra>
// kernel: tpu_custom_call.1
= control target key start
LH: loop header
LB: loop body
LE: loop exit
PB: predicated region body
PF: predicated region fallthrough
CT: control target
= control target key end

     0   :  { %vm73_vm0 = vcmask 261120   ;;  %s219_s0 = inlined_call_operand.vmem [shape: f32[8,32], index: 0, kind: input, shape index: {}]   ;;  %s220_s1 = inlined_call_operand.vmem [shape: s32[8,1], index: 1, kind: input, shape index: {}]   ;;  %s221_s2 = inlined_call_operand.hbm [shape: f32[1,128], index: 2, kind: output, shape index: {}]  }
   0x1   :  { %v71_v0 = vld [vmem:[%s219_s0] sm:$0xff] }
   0x2   :  { %7 = vsyncpa [#allocation3], 0  ;;  %v74_v1 = vsel %vm73_vm0, %v71_v0, -inf  ;;  %v180_v2 = vmov 0   ;;  %v72_v3 = vld [vmem:[%s220_s1] sm:$0xff]  ;;  %v86_v7 = vlaneseq  ;;  %vm106_vm2 = vcmask 7168  }
   0x3   :  { %151 = vset.pattern.permute.xlu0 %v180_v2  ;;  %v181_v21 = vmov 0.0   ;;  %s182_s0 = smov [#allocation2]  }
   0x4   :  { %75 = vmax.xlane.f32.xlu0 %v74_v1  ;;  %v87_v8 = vand.u32 127, %v86_v7  ;;  %70 = vst [vmem:[#allocation2] sm:$0x1] %v181_v21  ;;  %s126_s1 = sshll.u32 %s182_s0, 4  ;;  %s127_s1 = int_to_ptr.vmem [resolvable:$true] %s126_s1 }
   0x5   :  { %s156_s14 = scalar_lea.vmem %s127_s1, 16  ;;  %s160_s15 = scalar_lea.vmem %s127_s1, 32 }
   0x6   :  { %p157_p0 = scmp.ne.s32.totalorder %s127_s1, %s156_s14  ;;  %p161_p1 = scmp.lt.s32.totalorder %s127_s1, %s127_s1 }
   0x7   :  { %p162_p2 = scmp.lt.s32.totalorder %s160_s15, %s156_s14 }
   0x9   :  { %p163_p3 = por %p162_p2, %p161_p1 }
   0xb   :  { %v105_v29 = vld [vmem:[#allocation2] sm:$0x1]  ;;  %p164_p4 = pnand %p163_p3, %p157_p0 }
  0x1a   :  { %89 = vperm.xlu0 %151, %v72_v3  }
  0x91   :  { %v76_v4 = vpop.xlane.xlu0 %75 }
  0x92   :  { %v77_v5 = vsub.f32 %v71_v0, %v76_v4 }
  0x94   :  { %v78_v6 = vmul.f32 1.442695, %v77_v5 }
  0x96   :  { %152 = vpow2.f32 %v78_v6 }
  0x99   :  { %v90_v9 = vpop.permute.xlu0 %89 }
  0x9a   :  { %vm91_vm1 = vcmp.eq.s32.totalorder %v87_v8, %v90_v9 }
  0x9b   :  { %v92_v11 = vsel %vm91_vm1, %v71_v0, 0.0 }
  0x9c   :  { %v93_v13 = vsel %vm73_vm0, %v92_v11, 0.0 }
  0xa0   :  { %v153_v10 = vpop.eup %152 }
  0xa1   :  { %v80_v12 = vsel %vm73_vm0, %v153_v10, 0.0 }
  0xa2   :  { %81 = vadd.xlane.f32.xlu1 %v80_v12 }
  0xa6   :  { %94 = vadd.xlane.f32.xlu1 %v93_v13 }
 0x12f   :  { %v82_v14 = vpop.xlane.xlu1 %81 }
 0x130   :  { %154 = vlog2.f32 %v82_v14 }
 0x133   :  { %v95_v17 = vpop.xlane.xlu1 %94 }
 0x13a   :  { %v155_v15 = vpop.eup %154 }
 0x13b   :  { %v84_v16 = vmul.f32 0.6931472, %v155_v15 }
 0x13d   :  { %v85_v18 = vadd.f32 %v84_v16, %v76_v4 }
 0x13f   :  { %v103_v19 = vsub.f32 %v85_v18, %v95_v17 }
 0x141   :  { %v107_v20 = vsel %vm106_vm2, %v103_v19, 0.0 }
 0x142   :  { %108 = vadd.xlane.f32.xlu1 %v107_v20 }
 0x1cf   :  { %v109_v22 = vpop.xlane.xlu1 %108 }
 0x1d0   :  { %v110_v23 = vrot.slane %v109_v22, 4 }
 0x1d2   :  { %v111_v24 = vadd.f32 %v110_v23, %v109_v22 }
 0x1d4   :  { %v112_v25 = vrot.slane %v111_v24, 2 }
 0x1d6   :  { %v113_v26 = vadd.f32 %v112_v25, %v111_v24 }
 0x1d8   :  { %v114_v27 = vrot.slane %v113_v26, 1 }
 0x1da   :  { %v115_v28 = vadd.f32 %v114_v27, %v113_v26 }
 0x1dc   :  { %146 = vpush %v115_v28 }
 0x20d   :  { %s147_s13 = spop %146 }
 0x20e   :  { %v117_v30 = vstv %s147_s13 }
 0x20f   :  { %v118_v31 = vadd.f32 %v117_v30, %v105_v29 }
 0x211   :  { %119 = vst [vmem:[#allocation2] sm:$0x1] %v118_v31 }
 0x212   :  { %167 = shalt.err (!%p164_p4)
}
 0x213   :  { %s168_s18 = scalar_lea.hbm %s221_s2, 16 }
 0x214   :  { %p169_p5 = scmp.ne.s32.totalorder %s221_s2, %s168_s18  ;;  %p172_p6 = scmp.lt.u32.totalorder %s168_s18, %s221_s2 }
 0x216   :  { %p174_p7 = pnand %p172_p6, %p169_p5 }
 0x218   :  { %177 = shalt.err (!%p174_p7)
}
 0x219   :  { %129 = dma.vmem_to_hbm [thread:$0]  %s127_s1, 16, %s221_s2, [#allocation3]  }
 0x21a   :  { %178 = dma.done.wait [#allocation3], 16  }
 0x21b   :  { %179 = vsyncadd [#allocation3], 4294967280 }
 0x21c   :  { %133 = vsyncpa [#allocation3], 1 }

</bundles_post_ra>
